<compile_context>
chip_gen: v7x
topology: tpu7x:2x2x1
jax: 0.10.0
libtpu: 0.0.40
codegen_flags: <defaults>
</compile_context>

<pallas_src>
import math

import jax
import jax.numpy as jnp
from jax.experimental import pallas as pl
from jax.experimental.pallas import tpu as pltpu


_LANE = 128
_SMALL_SINGLE_BLOCK_BYTES = 512 * 1024   # below this, one full block is fine
_MIN_SPLIT_BYTES = 2 << 20               # above this, force >=4 blocks (v7x megacore)


def _copy_kernel(x_ref, o_ref):
    # Identity pass-through: the only "compute" an explicit Unflatten copy needs.
    o_ref[...] = x_ref[...]


def _vmem_budget():
    """(per_buffer_bytes, vmem_limit_bytes) derived from the chip's VMEM capacity."""
    vmem = 64 << 20  # conservative default (v7x-sized) if the query is unavailable
    try:
        vmem = int(getattr(pltpu.get_tpu_info(), "vmem_capacity_bytes", vmem))
    except Exception:
        pass
    # Four tile-sized buffers live at once (double-buffered input + output); keep the
    # whole pipeline well under half of physical VMEM, with explicit compiler headroom.
    per_buffer = max(1 << 20, min(8 << 20, vmem // 16))
    vmem_limit = min((vmem * 3) // 4, 96 << 20)
    return per_buffer, int(vmem_limit)


def _pallas_copy_2d(x2d: jax.Array, per_buffer_bytes: int, vmem_limit_bytes: int) -> jax.Array:
    """Row+column tiled, double-buffered HBM->HBM copy of a 2-D array through VMEM."""
    M, N = x2d.shape
    itemsize = x2d.dtype.itemsize
    total_bytes = M * N * itemsize

    # Sublane packing: 8 rows for 32-bit, 16 for bf16, 32 for int8.
    sublane = max(8, 32 // itemsize)

    # ---- Column (lane) tile: full width when it fits one buffer, else a multiple
    #      of 128 (keeps per-buffer size bounded for arbitrarily wide rows). ----
    if N <= _LANE or N * itemsize * sublane <= per_buffer_bytes:
        tc = N
    else:
        max_cols = per_buffer_bytes // (sublane * itemsize)
        tc = max(_LANE, (min(N, max_cols) // _LANE) * _LANE)

    # ---- Row (sublane) tile: as many rows as fit in one buffer. ----
    max_rows = max(1, per_buffer_bytes // (tc * itemsize))
    if max_rows >= M:
        tr = M
    else:
        tr = max(sublane, (max_rows // sublane) * sublane)
    tr = min(tr, M)

    # ---- Mid/large arrays: guarantee >=4 grid blocks so v7x's two TensorCores can
    #      split the copy ("parallel" semantics); free on single-TC v5e/v6e. ----
    if (pl.cdiv(M, tr) * pl.cdiv(N, tc) < 4
            and total_bytes >= _MIN_SPLIT_BYTES
            and M >= 4 * sublane):
        tr = min(tr, max(sublane, ((M // 4) // sublane) * sublane))

    grid = (pl.cdiv(M, tr), pl.cdiv(N, tc))

    return pl.pallas_call(
        _copy_kernel,
        out_shape=jax.ShapeDtypeStruct((M, N), x2d.dtype),
        grid=grid,
        in_specs=[pl.BlockSpec((tr, tc), lambda i, j: (i, j))],
        out_specs=pl.BlockSpec((tr, tc), lambda i, j: (i, j)),
        compiler_params=pltpu.CompilerParams(
            dimension_semantics=("parallel", "parallel"),
            vmem_limit_bytes=vmem_limit_bytes,
        ),
        cost_estimate=pl.CostEstimate(
            flops=0,
            transcendentals=0,
            bytes_accessed=2 * total_bytes,
        ),
    )(x2d)


def unflatten(
    x: jax.Array,
    input_dim: int = 2,
    *,
    materialize: bool = False,
    per_buffer_bytes: int | None = None,
) -> jax.Array:
    """Pallas/JAX equivalent of the PyTorch Unflatten module.

    Appends `input_dim` trailing singleton dimensions (torch's repeated .unsqueeze(-1)).

    Default path is metadata-only (no kernel, no HBM traffic) — the fastest possible
    implementation of this op.  `materialize=True` routes the data through a tiled,
    pipelined Pallas copy kernel instead (fresh HBM buffer).
    """
    out_shape = tuple(x.shape) + (1,) * input_dim

    if not materialize:
        # Pure metadata: exactly what torch's repeated unsqueeze(-1) does.
        return x.reshape(out_shape)

    total = x.size
    if total == 0:
        return x.reshape(out_shape)

    itemsize = x.dtype.itemsize
    budget, vmem_limit = _vmem_budget()
    if per_buffer_bytes is not None:
        budget = max(int(per_buffer_bytes), _LANE * itemsize)

    flat = x.reshape(-1)

    # Biggest single lever: copy through a lane-dense slab whose last dim is a large
    # multiple of 128 (unmasked full-vreg stores, wide contiguous DMAs).
    slab_w = next(
        (w for w in (8192, 4096, 2048, 1024, 512, 256, 128) if total % w == 0), None
    )

    if slab_w is not None:
        copied = _pallas_copy_2d(flat.reshape(total // slab_w, slab_w), budget, vmem_limit)
    elif total * itemsize <= _SMALL_SINGLE_BLOCK_BYTES:
        # Small and not a multiple of 128: one full block; masking cost is irrelevant.
        copied = _pallas_copy_2d(flat.reshape(1, total), budget, vmem_limit)
    elif x.ndim >= 2:
        # Large but element count not a multiple of 128: natural (leading, last) view;
        # the generic row+column tiling still bounds per-buffer VMEM.
        copied = _pallas_copy_2d(
            x.reshape(math.prod(x.shape[:-1]), x.shape[-1]), budget, vmem_limit
        )
    else:
        # Large 1-D array of odd length: lane-aligned head + tiny tail.
        main = (total // _LANE) * _LANE
        head = _pallas_copy_2d(flat[:main].reshape(main // _LANE, _LANE), budget, vmem_limit)
        tail = _pallas_copy_2d(flat[main:].reshape(1, total - main), budget, vmem_limit)
        copied = jnp.concatenate([head.reshape(-1), tail.reshape(-1)])

    return copied.reshape(out_shape)


if __name__ == "__main__":
    key = jax.random.PRNGKey(0)
    batch, hidden = 2, 32
    input_dim = 2
    x = jax.random.normal(key, (batch, hidden), dtype=jnp.float32)

    # 1) Default (fast) path: metadata-only reshape — exact Unflatten semantics.
    y = unflatten(x, input_dim=input_dim)
    jax.block_until_ready(y)
    assert y.shape == (batch, hidden) + (1,) * input_dim, y.shape
    assert y.dtype == x.dtype
    assert bool(jnp.all(y.reshape(batch, hidden) == x))

    # 2) Materialized path on the tiny input (total=64, not a multiple of 128 ->
    #    single full-block copy; block shape == full dims is always legal).
    y2 = unflatten(x, input_dim=input_dim, materialize=True)
    jax.block_until_ready(y2)
    assert y2.shape == y.shape
    assert bool(jnp.all(y2 == y))

    # 3) Lane-dense slab path with a tiny per-buffer budget to force column tiling
    #    and a partial (masked) final row block: (256, 272) f32 -> slab (17, 4096),
    #    32 KiB buffers -> blocks (8, 1024), grid (3, 4).
    x3 = jax.random.normal(jax.random.PRNGKey(1), (256, 272), dtype=jnp.float32)
    y3 = unflatten(x3, input_dim=3, materialize=True, per_buffer_bytes=32 * 1024)
    jax.block_until_ready(y3)
    assert y3.shape == (256, 272, 1, 1, 1), y3.shape
    assert bool(jnp.all(y3.reshape(256, 272) == x3))

    # 4) Array large enough to trigger the >=4-block row split (v7x megacore path)
    #    with the natural, VMEM-derived budget: 1024x1024 f32 = 4 MiB -> slab
    #    (128, 8192), row blocks of 32 -> grid (4, 1).
    x4 = jax.random.normal(jax.random.PRNGKey(2), (1024, 1024), dtype=jnp.float32)
    y4 = unflatten(x4, input_dim=1, materialize=True)
    jax.block_until_ready(y4)
    assert y4.shape == (1024, 1024, 1), y4.shape
    assert bool(jnp.all(y4.reshape(1024, 1024) == x4))

    # 5) Odd element count on a >=2-D array (small non-lane-aligned fallback:
    #    single full-block (1, 8481) copy).
    x5 = jax.random.normal(jax.random.PRNGKey(3), (33, 257), dtype=jnp.float32)
    y5 = unflatten(x5, input_dim=2, materialize=True)
    jax.block_until_ready(y5)
    assert y5.shape == (33, 257, 1, 1), y5.shape
    assert bool(jnp.all(y5.reshape(33, 257) == x5))

    print("KERNEL_OK")
</pallas_src>

<mosaic_0001>
module attributes {stable_mosaic.version = 11 : i64} {
  func.func @_copy_kernel(%arg0: i32, %arg1: i32, %arg2: memref<1x64xf32, #tpu.memory_space<vmem>>, %arg3: memref<1x64xf32, #tpu.memory_space<vmem>>) attributes {dimension_semantics = [#tpu.dimension_semantics<parallel>, #tpu.dimension_semantics<parallel>], iteration_bounds = array<i64: 1, 1>, scalar_prefetch = 0 : i64, scratch_operands = 0 : i64, tpu.core_type = #tpu.core_type<tc>, window_params = [{transform_indices = @transform_0, window_bounds = array<i64: 1, 64>}, {transform_indices = @transform_1, window_bounds = array<i64: 1, 64>}]} {
    %c0 = arith.constant 0 : index
    %c0_0 = arith.constant 0 : index
    %0 = vector.load %arg2[%c0, %c0_0] : memref<1x64xf32, #tpu.memory_space<vmem>>, vector<1x64xf32>
    %c0_1 = arith.constant 0 : index
    %c0_2 = arith.constant 0 : index
    %1 = vector.load %arg3[%c0_1, %c0_2] : memref<1x64xf32, #tpu.memory_space<vmem>>, vector<1x64xf32>
    tpu.vector_store %arg3[%c0_1, %c0_2], %0 {strides = array<i32>} : memref<1x64xf32, #tpu.memory_space<vmem>>, vector<1x64xf32>,
    return
  }
  func.func @transform_0(%arg0: i32, %arg1: i32) -> (i32, i32) {
    %c0_i32 = arith.constant 0 : i32
    return %arg0, %arg1 : i32, i32
  }
  func.func @transform_1(%arg0: i32, %arg1: i32) -> (i32, i32) {
    %c0_i32 = arith.constant 0 : i32
    return %arg0, %arg1 : i32, i32
  }
}

</mosaic_0001>

<bundles_post_ra>
// kernel: tpu_custom_call.1
= control target key start
LH: loop header
LB: loop body
LE: loop exit
PB: predicated region body
PF: predicated region fallthrough
CT: control target
= control target key end

     0   :  { %6 = vsyncpa [#allocation3], 0  ;;  %s125_s0 = inlined_call_operand.hbm [shape: f32[1,64], index: 0, kind: input, shape index: {}]   ;;  %s126_s1 = inlined_call_operand.hbm [shape: f32[1,64], index: 1, kind: output, shape index: {}]  }
   0x1   :  { %7 = vsyncpa [#allocation4], 0  ;;  %s89_s6 = smov [#allocation2]   ;;  %s41_s10 = scalar_lea.hbm %s125_s0, 16 }
   0x2   :  { %s14_s7 = sshll.u32 %s89_s6, 4  ;;  %p42_p0 = scmp.ne.s32.totalorder %s125_s0, %s41_s10  ;;  %s15_s7 = int_to_ptr.vmem [resolvable:$true] %s14_s7 }
   0x3   :  { %p45_p1 = scmp.lt.u32.totalorder %s41_s10, %s125_s0 }
   0x5   :  { %p47_p2 = pnand %p45_p1, %p42_p0 }
   0x7   :  { %50 = shalt.err (!%p47_p2)
}
   0x8   :  { %s51_s15 = scalar_lea.vmem %s15_s7, 16  ;;  %s55_s16 = scalar_lea.vmem %s15_s7, 32 }
   0x9   :  { %p52_p3 = scmp.ne.s32.totalorder %s15_s7, %s51_s15  ;;  %p56_p4 = scmp.lt.s32.totalorder %s15_s7, %s15_s7 }
   0xa   :  { %p57_p5 = scmp.lt.s32.totalorder %s55_s16, %s51_s15 }
   0xc   :  { %p58_p6 = por %p57_p5, %p56_p4 }
   0xe   :  { %p59_p7 = pnand %p58_p6, %p52_p3 }
  0x10   :  { %62 = shalt.err (!%p59_p7)
}
  0x11   :  { %17 = dma.hbm_to_vmem [thread:$0]  %s125_s0, 16, %s15_s7, [#allocation3]  }
  0x12   :  { %85 = dma.done.wait [#allocation3], 16  }
  0x13   :  { %86 = vsyncadd [#allocation3], 4294967280  ;;  %s90_s19 = smov [#allocation5]   ;;  %vm22_vm0 = vcmask 516096   ;;  %v21_v0 = vld [vmem:[#allocation2] sm:$0x1] }
  0x14   :  { %s30_s20 = sshll.u32 %s90_s19, 4  ;;  %23 = vst.msk [vmem:[#allocation5] sm:$0x1] %vm22_vm0, %v21_v0  ;;  %s31_s20 = int_to_ptr.vmem [resolvable:$true] %s30_s20 }
  0x15   :  { %s63_s21 = scalar_lea.vmem %s31_s20, 16  ;;  %s67_s22 = scalar_lea.vmem %s31_s20, 32 }
  0x16   :  { %p64_p8 = scmp.ne.s32.totalorder %s31_s20, %s63_s21  ;;  %p68_p9 = scmp.lt.s32.totalorder %s31_s20, %s31_s20 }
  0x17   :  { %p69_p10 = scmp.lt.s32.totalorder %s67_s22, %s63_s21 }
  0x19   :  { %p70_p11 = por %p69_p10, %p68_p9 }
  0x1b   :  { %p71_p12 = pnand %p70_p11, %p64_p8 }
  0x1d   :  { %74 = shalt.err (!%p71_p12)
}
  0x1e   :  { %s75_s0 = scalar_lea.hbm %s126_s1, 16 }
  0x1f   :  { %p76_p13 = scmp.ne.s32.totalorder %s126_s1, %s75_s0  ;;  %p79_p0 = scmp.lt.u32.totalorder %s75_s0, %s126_s1 }
  0x21   :  { %p81_p1 = pnand %p79_p0, %p76_p13 }
  0x23   :  { %84 = shalt.err (!%p81_p1)
}
  0x24   :  { %33 = dma.vmem_to_hbm [thread:$0]  %s31_s20, 16, %s126_s1, [#allocation4]  }
  0x25   :  { %87 = dma.done.wait [#allocation4], 16  }
  0x26   :  { %88 = vsyncadd [#allocation4], 4294967280 }
  0x27   :  { %37 = vsyncpa [#allocation3], 1 }
  0x28   :  { %38 = vsyncpa [#allocation4], 1 }

</bundles_post_ra>
